<compile_context>
chip_gen: v7x
topology: tpu7x:2x2x1
jax: 0.10.0
libtpu: 0.0.40
codegen_flags: <defaults>
</compile_context>

<pallas_src>
import functools

import jax
import jax.numpy as jnp
from jax.experimental import pallas as pl
from jax.experimental.pallas import tpu as pltpu


def _round_up(x, m):
    return ((x + m - 1) // m) * m


def _cdiv(a, b):
    return (a + b - 1) // b


def _vmem_capacity_bytes():
    """Per-core VMEM capacity; conservative fallback (v7x = 64 MiB) if unavailable."""
    try:
        cap = int(pltpu.get_tpu_info().vmem_capacity_bytes)
        if cap > 0:
            return cap
    except Exception:
        pass
    return 64 * 1024 * 1024


def _block_footprint_bytes(tm, tn, tk, nk, in_bytes, out_bytes):
    # Double-buffered input blocks + double-buffered output block (+ f32 acc if K is split).
    fp = 2 * (tm * tk + tk * tn) * in_bytes + 2 * tm * tn * out_bytes
    if nk > 1:
        fp += tm * tn * 4
    return fp


def _choose_kn_tiles(K, V, in_bytes, out_bytes, budget):
    """Pick (tk, tn) once per weight (M-independent). tm is picked per forward call.

    Shrink priority when over the VMEM budget: tm (free in HBM bytes) -> tn (costs extra
    activation re-reads) -> split tk (3D grid re-streams both operands + f32 accumulator).
    """
    tk = K if K <= 8192 else 4096
    nk = _cdiv(K, tk)
    tn = min(2048, _round_up(V, 128))
    tm_ref = 256

    def fits(tm_, tn_, tk_, nk_):
        return _block_footprint_bytes(tm_, tn_, tk_, nk_, in_bytes, out_bytes) <= budget

    while not fits(tm_ref, tn, tk, nk) and tm_ref > 64:
        tm_ref //= 2
    while not fits(tm_ref, tn, tk, nk) and tn > 256:
        tn = max(256, ((tn // 2) // 128) * 128)
    while not fits(tm_ref, tn, tk, nk) and tk > 1024:
        tk = max(1024, tk // 2)
        nk = _cdiv(K, tk)
    while not fits(tm_ref, tn, tk, nk) and tn > 128:
        tn = 128
    while not fits(tm_ref, tn, tk, nk) and tm_ref > 16:
        tm_ref //= 2
    # Worst case (tm=16, tn=128, tk<=1024, bf16) is < 1 MiB -> always fits.
    return tk, tn, tm_ref


def _choose_tm(M, tk, tn, nk, in_bytes, out_bytes, budget):
    """Largest bf16-friendly (multiple-of-16) row tile that fits the VMEM budget."""
    m16 = _round_up(max(M, 1), 16)
    cands = [512, 256, 128, 64, 32, 16]
    if m16 <= 512:
        cands = [m16] + [c for c in cands if c < m16]
    for tm in cands:
        if _block_footprint_bytes(tm, tn, tk, nk, in_bytes, out_bytes) <= budget:
            return tm
    return 16


def _lmhead_kernel_single_k(h_ref, w_ref, o_ref):
    # Whole reduction dim resident in one block: no scratch accumulator needed.
    o_ref[...] = jnp.dot(
        h_ref[...], w_ref[...], preferred_element_type=jnp.float32
    ).astype(o_ref.dtype)


def _lmhead_kernel_multi_k(h_ref, w_ref, o_ref, acc_ref):
    @pl.when(pl.program_id(2) == 0)
    def _():
        acc_ref[...] = jnp.zeros_like(acc_ref)

    acc_ref[...] += jnp.dot(h_ref[...], w_ref[...], preferred_element_type=jnp.float32)

    @pl.when(pl.program_id(2) == pl.num_programs(2) - 1)
    def _():
        o_ref[...] = acc_ref[...].astype(o_ref.dtype)


@functools.partial(
    jax.jit,
    static_argnames=("tm", "tn", "tk", "vocab", "compute_dtype", "out_dtype",
                     "vmem_limit_bytes"),
)
def _lmhead_forward(h, w_padded, *, tm, tn, tk, vocab, compute_dtype, out_dtype,
                    vmem_limit_bytes):
    """h: (..., hidden), w_padded: (K_pad, V_pad) pre-padded bf16 weight -> (..., vocab)."""
    lead = h.shape[:-1]
    H = h.shape[-1]
    M = 1
    for d in lead:
        M *= d
    K_pad, V_pad = w_padded.shape

    # Reshape + cast inside jit so the f32->bf16 activation cast fuses.
    h2d = h.reshape(M, H).astype(compute_dtype)
    M_pad = _round_up(max(M, 1), tm)
    if (M_pad, K_pad) != (M, H):
        h2d = jnp.pad(h2d, ((0, M_pad - M), (0, K_pad - H)))

    nm, nn, nk = M_pad // tm, V_pad // tn, K_pad // tk

    if nk == 1:
        # Vocab axis outermost, row axis innermost: the (tk x tn) weight block is
        # fetched once per vocab tile and stays resident across the inner M sweep.
        out = pl.pallas_call(
            _lmhead_kernel_single_k,
            out_shape=jax.ShapeDtypeStruct((M_pad, V_pad), out_dtype),
            grid_spec=pltpu.PrefetchScalarGridSpec(
                num_scalar_prefetch=0,
                grid=(nn, nm),
                in_specs=[
                    pl.BlockSpec((tm, tk), lambda j, i: (i, 0)),
                    pl.BlockSpec((tk, tn), lambda j, i: (0, j)),
                ],
                out_specs=pl.BlockSpec((tm, tn), lambda j, i: (i, j)),
            ),
            compiler_params=pltpu.CompilerParams(
                dimension_semantics=("parallel", "parallel"),
                vmem_limit_bytes=vmem_limit_bytes,
            ),
        )(h2d, w_padded)
    else:
        out = pl.pallas_call(
            _lmhead_kernel_multi_k,
            out_shape=jax.ShapeDtypeStruct((M_pad, V_pad), out_dtype),
            grid_spec=pltpu.PrefetchScalarGridSpec(
                num_scalar_prefetch=0,
                grid=(nn, nm, nk),
                in_specs=[
                    pl.BlockSpec((tm, tk), lambda j, i, k: (i, k)),
                    pl.BlockSpec((tk, tn), lambda j, i, k: (k, j)),
                ],
                out_specs=pl.BlockSpec((tm, tn), lambda j, i, k: (i, j)),
                scratch_shapes=[pltpu.VMEM((tm, tn), jnp.float32)],
            ),
            compiler_params=pltpu.CompilerParams(
                dimension_semantics=("parallel", "parallel", "arbitrary"),
                vmem_limit_bytes=vmem_limit_bytes,
            ),
        )(h2d, w_padded)

    out = out[:M, :vocab]
    return out.reshape(*lead, vocab)


class BaselineLMHeadPallas:
    """Mirrors the PyTorch BaselineLMHead: stores weight.T, forward = h @ weight.T.

    Operands are kept/cast to bf16 (MXU-native; halves weight HBM traffic), the matmul
    accumulates in f32 on the MXU, and logits default to f32 (bf16 available via out_dtype).
    """
    # TODO(synk): bf16 operands deviate from bit-exact f32 PyTorch semantics; add an f32
    # compute path if exact parity with BaselineLMHead is required.

    def __init__(self, weight, compute_dtype=jnp.bfloat16, out_dtype=jnp.float32):
        self.compute_dtype = jnp.dtype(compute_dtype)
        self.out_dtype = jnp.dtype(out_dtype)

        # weight: (vocab, hidden) -> stored transposed as (hidden, vocab)
        w = jnp.asarray(weight).T.astype(self.compute_dtype)
        K, V = w.shape
        self.hidden, self.vocab = K, V

        in_bytes = self.compute_dtype.itemsize
        out_bytes = self.out_dtype.itemsize
        self._vmem_cap = _vmem_capacity_bytes()
        # Footprint already includes double buffering -> 0.70*cap is the real budget.
        self._vmem_budget = int(0.70 * self._vmem_cap)

        self.tk, self.tn, self._tm_ref = _choose_kn_tiles(
            K, V, in_bytes, out_bytes, self._vmem_budget)

        # Pad the weight ONCE at init (no per-forward jnp.pad of the vocab-sized weight).
        K_pad = _round_up(K, self.tk)
        V_pad = _round_up(V, self.tn)
        if (K_pad, V_pad) != (K, V):
            w = jnp.pad(w, ((0, K_pad - K), (0, V_pad - V)))
        self.weight = w
        self._nk = K_pad // self.tk

    def __call__(self, h):
        assert h.shape[-1] == self.hidden
        M = 1
        for d in h.shape[:-1]:
            M *= d

        in_bytes = self.compute_dtype.itemsize
        out_bytes = self.out_dtype.itemsize
        tm = _choose_tm(M, self.tk, self.tn, self._nk, in_bytes, out_bytes,
                        self._vmem_budget)
        footprint = _block_footprint_bytes(tm, self.tn, self.tk, self._nk,
                                           in_bytes, out_bytes)
        vmem_limit = int(min(self._vmem_cap - (2 << 20), footprint + (8 << 20)))

        return _lmhead_forward(
            h,
            self.weight,
            tm=tm,
            tn=self.tn,
            tk=self.tk,
            vocab=self.vocab,
            compute_dtype=self.compute_dtype,
            out_dtype=self.out_dtype,
            vmem_limit_bytes=vmem_limit,
        )


if __name__ == "__main__":
    # Small, deterministic shapes consistent with an LM-head forward.
    batch, seq, hidden, vocab = 2, 8, 32, 256

    key = jax.random.PRNGKey(0)
    k_w, k_h = jax.random.split(key)
    # PyTorch module receives `weight` of shape (vocab, hidden) and transposes it.
    weight = jax.random.normal(k_w, (vocab, hidden), dtype=jnp.float32) * 0.02
    h = jax.random.normal(k_h, (batch, seq, hidden), dtype=jnp.float32)

    model = BaselineLMHeadPallas(weight)
    logits = jax.block_until_ready(model(h))
    assert logits.shape == (batch, seq, vocab)

    # Reference 1: same precision recipe (bf16 operands, f32 accumulation) -> tight match.
    ref_bf16 = jnp.einsum(
        "bsh,hv->bsv",
        h.astype(jnp.bfloat16),
        weight.T.astype(jnp.bfloat16),
        preferred_element_type=jnp.float32,
    )
    assert jnp.allclose(logits, ref_bf16, atol=2e-3, rtol=2e-3)

    # Reference 2: full-f32 semantics of the PyTorch module -> loose match (bf16 cast error).
    ref_f32 = h @ weight.T
    assert jnp.allclose(logits, ref_f32, atol=2e-2, rtol=2e-2)

    print("KERNEL_OK")
</pallas_src>

<mosaic_0001>
module attributes {stable_mosaic.version = 11 : i64} {
  func.func @_lmhead_kernel_single_k(%arg0: i32, %arg1: i32, %arg2: memref<16x32xbf16, #tpu.memory_space<vmem>>, %arg3: memref<32x256xbf16, #tpu.memory_space<vmem>>, %arg4: memref<16x256xf32, #tpu.memory_space<vmem>>) attributes {dimension_semantics = [#tpu.dimension_semantics<parallel>, #tpu.dimension_semantics<parallel>], iteration_bounds = array<i64: 1, 1>, scalar_prefetch = 0 : i64, scratch_operands = 0 : i64, tpu.core_type = #tpu.core_type<tc>, window_params = [{transform_indices = @transform_0, window_bounds = array<i64: 16, 32>}, {transform_indices = @transform_1, window_bounds = array<i64: 32, 256>}, {transform_indices = @transform_2, window_bounds = array<i64: 16, 256>}]} {
    %c0 = arith.constant 0 : index
    %c0_0 = arith.constant 0 : index
    %0 = vector.load %arg2[%c0, %c0_0] : memref<16x32xbf16, #tpu.memory_space<vmem>>, vector<16x32xbf16>
    %c0_1 = arith.constant 0 : index
    %c0_2 = arith.constant 0 : index
    %1 = vector.load %arg3[%c0_1, %c0_2] : memref<32x256xbf16, #tpu.memory_space<vmem>>, vector<32x256xbf16>
    %cst = arith.constant dense<0.000000e+00> : vector<16x256xf32>
    %2 = tpu.matmul %0, %1, %cst {dimension_numbers = #tpu.dot_dimension_numbers<[1], [0], [0], [1], [0, 0, 1, 1], [], []>} : vector<16x32xbf16>, vector<32x256xbf16>, vector<16x256xf32> -> vector<16x256xf32>
    %c0_3 = arith.constant 0 : index
    %c0_4 = arith.constant 0 : index
    %3 = vector.load %arg4[%c0_3, %c0_4] : memref<16x256xf32, #tpu.memory_space<vmem>>, vector<16x256xf32>
    tpu.vector_store %arg4[%c0_3, %c0_4], %2 {strides = array<i32>} : memref<16x256xf32, #tpu.memory_space<vmem>>, vector<16x256xf32>,
    return
  }
  func.func @transform_0(%arg0: i32, %arg1: i32) -> (i32, i32) {
    %c0_i32 = arith.constant 0 : i32
    %c0_i32_0 = arith.constant 0 : i32
    return %arg1, %c0_i32 : i32, i32
  }
  func.func @transform_1(%arg0: i32, %arg1: i32) -> (i32, i32) {
    %c0_i32 = arith.constant 0 : i32
    %c0_i32_0 = arith.constant 0 : i32
    return %c0_i32, %arg0 : i32, i32
  }
  func.func @transform_2(%arg0: i32, %arg1: i32) -> (i32, i32) {
    %c0_i32 = arith.constant 0 : i32
    return %arg1, %arg0 : i32, i32
  }
}

</mosaic_0001>

<bundles_post_ra>
// kernel: _lmhead_forward.1
= control target key start
LH: loop header
LB: loop body
LE: loop exit
PB: predicated region body
PF: predicated region fallthrough
CT: control target
= control target key end

     0   :  { %7 = vsyncpa [#allocation3], 0  ;;  %s243_s0 = inlined_call_operand.vmem [shape: bf16[16,32], index: 0, kind: input, shape index: {}]   ;;  %s244_s1 = inlined_call_operand.hbm [shape: bf16[32,256], index: 1, kind: input, shape index: {}]   ;;  %s245_s2 = inlined_call_operand.hbm [shape: f32[16,256], index: 2, kind: output, shape index: {}]  }
   0x1   :  { %8 = vsyncpa [#allocation4], 0  ;;  %s194_s9 = smov [#allocation2]   ;;  %s146_s13 = scalar_lea.hbm %s244_s1, 512 }
   0x2   :  { %s16_s10 = sshll.u32 %s194_s9, 4  ;;  %p147_p0 = scmp.ne.s32.totalorder %s244_s1, %s146_s13  ;;  %s17_s10 = int_to_ptr.vmem [resolvable:$true] %s16_s10 }
   0x3   :  { %p150_p1 = scmp.lt.u32.totalorder %s146_s13, %s244_s1 }
   0x5   :  { %p152_p2 = pnand %p150_p1, %p147_p0 }
   0x7   :  { %155 = shalt.err (!%p152_p2)
}
   0x8   :  { %s156_s18 = scalar_lea.vmem %s17_s10, 512  ;;  %p161_p4 = scmp.lt.s32.totalorder %s17_s10, %s17_s10 }
   0x9   :  { %p157_p3 = scmp.ne.s32.totalorder %s17_s10, %s156_s18  ;;  %p162_p5 = scmp.lt.s32.totalorder %s156_s18, %s156_s18 }
   0xb   :  { %p163_p6 = por %p162_p5, %p161_p4 }
   0xd   :  { %p164_p7 = pnand %p163_p6, %p157_p3 }
   0xf   :  { %167 = shalt.err (!%p164_p7)
}
  0x10   :  { %s195_s19 = smov 128   ;;  %s196_s20 = smov 8  }
  0x11   :  { %22 = dma.hbm_to_vmem [thread:$0]  %s244_s1, 512, %s17_s10, [#allocation3], %s195_s19, %s195_s19, %s196_s20  }
  0x12   :  { %190 = dma.done.wait [#allocation3], 512  }
  0x13   :  { %191 = vsyncadd [#allocation3], 4294966784  ;;  %v197_v0 = vmov 0   ;;  %v139_v1 = vld [vmem:[#allocation2 + $0x4] ss:$8 sps:$4 sm:$0xff]   ;;  %vm58_vm0 = vcmask 261120  }
  0x14   :  { %94 = vmatprep.mubr.bf16.mxu0 %v197_v0  ;;  %v141_v2 = vld [vmem:[#allocation2] ss:$8 sps:$4 sm:$0xff]   ;;  %62 = vmatprep.subr.bf16.mxu0 %v139_v1  ;;  %v142_v3 = vld [vmem:[#allocation2 + $0x14] ss:$8 sps:$4 sm:$0xff]   ;;  %v144_v4 = vld [vmem:[#allocation2 + $0x10] ss:$8 sps:$4 sm:$0xff]  }
  0x15   :  { %63 = vmatpush1.bf16.msra.mxu0 %v141_v2  ;;  %v145_v5 = vld [vmem:[%s243_s0] sm:$0xff]   ;;  %s198_s25 = smov [#allocation5]  }
  0x16   :  { %64 = vmatprep.subr.bf16.mxu0 %v142_v3  ;;  %s114_s1 = sshll.u32 %s198_s25, 4  ;;  %s115_s1 = int_to_ptr.vmem [resolvable:$true] %s114_s1 }
  0x17   :  { %s168_s26 = scalar_lea.vmem %s115_s1, 512  ;;  %p173_p9 = scmp.lt.s32.totalorder %s115_s1, %s115_s1 }
  0x18   :  { %p169_p8 = scmp.ne.s32.totalorder %s115_s1, %s168_s26  ;;  %p174_p10 = scmp.lt.s32.totalorder %s168_s26, %s168_s26 }
  0x19   :  { %65 = vmatpush1.bf16.msra.mxu0 %v144_v4 }
  0x1a   :  { %p175_p11 = por %p174_p10, %p173_p9 }
  0x1c   :  { %131 = vmatmul.mubr.msk.bf16.vlgmr.msra.gmra.mrb[0].mxu0 %vm58_vm0, %v145_v5  ;;  %p176_p12 = pnand %p175_p11, %p169_p8 }
  0xef   :  { %v96_v6 = vpop.f32.mrb[0].mxu0 }
  0xf0   :  { %105 = vst [vmem:[#allocation5] sm:$0xff] %v96_v6  ;;  %v98_v7 = vpop.f32.mrb[1].mxu0 }
  0xf1   :  { %106 = vst [vmem:[#allocation5 + $0x8] sm:$0xff] %v98_v7  ;;  %v100_v8 = vpop.f32.mrb[2].mxu0 }
  0xf2   :  { %107 = vst [vmem:[#allocation5 + $0x10] sm:$0xff] %v100_v8  ;;  %v102_v9 = vpop.f32.mrb[3].mxu0 }
  0xf3   :  { %108 = vst [vmem:[#allocation5 + $0x18] sm:$0xff] %v102_v9 }
  0xf4   :  { %179 = shalt.err (!%p176_p12)
}
  0xf5   :  { %s180_s28 = scalar_lea.hbm %s245_s2, 512 }
  0xf6   :  { %p181_p13 = scmp.ne.s32.totalorder %s245_s2, %s180_s28  ;;  %p184_p0 = scmp.lt.u32.totalorder %s180_s28, %s245_s2 }
  0xf8   :  { %p186_p1 = pnand %p184_p0, %p181_p13 }
  0xfa   :  { %189 = shalt.err (!%p186_p1)
}
  0xfb   :  { %s199_s5 = smov 256   ;;  %s200_s6 = smov 16  }
  0xfc   :  { %120 = dma.vmem_to_hbm [thread:$0]  %s115_s1, 512, %s245_s2, [#allocation4], %s199_s5, %s199_s5, %s200_s6  }
  0xfd   :  { %192 = dma.done.wait [#allocation4], 512  }
  0xfe   :  { %193 = vsyncadd [#allocation4], 4294966784 }
  0xff   :  { %124 = vsyncpa [#allocation3], 1 }
 0x100   :  { %125 = vsyncpa [#allocation4], 1 }

</bundles_post_ra>
